<compile_context>
chip_gen: v5e
topology: v5e:2x2
jax: 0.10.0
libtpu: 0.0.40
codegen_flags: <defaults>
</compile_context>

<pallas_src>
import functools
import math

import jax
import jax.numpy as jnp
from jax import lax
from jax.experimental import pallas as pl
from jax.experimental.pallas import tpu as pltpu

EMBED = 256
NUM_HEADS = 4
HEAD_DIM = EMBED // NUM_HEADS          # 64
VPAD = 128                             # lane-padded width of folded-V projection
SLAB = 2 * EMBED + VPAD                # 640 = [ q*scale | k | v_fold(128) ]
FUSE_MAX = 256                         # single fused kernel up to this many rows


def _round_up(n, m):
    return ((n + m - 1) // m) * m


def _use_bf16_exp():
    """bf16 EUP exists on v6e / v7x; keep f32 exp on older generations (v5e, ...)."""
    try:
        kind = jax.devices()[0].device_kind.lower()
    except Exception:
        return False
    return any(tag in kind for tag in ("v6", "v7", "tpu7"))


# --------------------------------------------------------------------------
# Fused kernel (B <= FUSE_MAX): projection + attention + folded output, grid=(1,)
# --------------------------------------------------------------------------
def _fused_kernel(x_ref, w_ref, b_ref, bol_ref, out_ref, *, l_real, bf16_exp):
    l_pad = x_ref.shape[0]
    x = x_ref[...]                                                     # (L, 256) bf16

    # slab = x @ [wq*scale | wk | wv_fold] + bias    (single MXU matmul)
    slab = jnp.dot(x, w_ref[...], preferred_element_type=jnp.float32) + b_ref[...]
    q = slab[:, :EMBED].astype(jnp.bfloat16)                           # pre-scaled by 1/sqrt(dh)
    k = slab[:, EMBED:2 * EMBED].astype(jnp.bfloat16)
    vp = slab[:, 2 * EMBED:SLAB].astype(jnp.bfloat16)                  # (L, 128); cols 0..3 = folded V

    if l_pad > l_real:  # static: mask zero-padded key rows out of the softmax
        key_mask = lax.broadcasted_iota(jnp.int32, (1, l_pad), 1) < l_real   # (1, L)
    else:
        key_mask = None

    acc = jnp.zeros((l_pad, 1), jnp.float32)
    for h in range(NUM_HEADS):                                         # static unroll, 4 heads
        lo = h * HEAD_DIM
        # scores = qh @ kh^T without materializing a transpose
        s = lax.dot_general(q[:, lo:lo + HEAD_DIM], k[:, lo:lo + HEAD_DIM],
                            (((1,), (1,)), ((), ())),
                            preferred_element_type=jnp.float32)        # (L, L)
        if key_mask is not None:
            s = jnp.where(key_mask, s, -1e30)
        m = jnp.max(s, axis=-1, keepdims=True)
        if bf16_exp:
            p = jnp.exp((s - m).astype(jnp.bfloat16))                  # bf16 EUP path
            denom = jnp.sum(p, axis=-1, keepdims=True, dtype=jnp.float32)
        else:
            p32 = jnp.exp(s - m)
            denom = jnp.sum(p32, axis=-1, keepdims=True)
            p = p32.astype(jnp.bfloat16)
        # folded V: one 128-wide MXU pass, pick this head's column
        r = jnp.dot(p, vp, preferred_element_type=jnp.float32)[:, h:h + 1]   # (L, 1)
        acc = acc + r * pl.reciprocal(denom, approx=True)              # deferred normalization
    out_ref[...] = acc + bol_ref[0, 0]


# --------------------------------------------------------------------------
# Stage 1 (B > FUSE_MAX): row-tiled fused projection slab = x @ W_all + b_all
# --------------------------------------------------------------------------
def _proj_kernel(x_ref, w_ref, b_ref, slab_ref):
    acc = jnp.dot(x_ref[...], w_ref[...], preferred_element_type=jnp.float32)
    slab_ref[...] = (acc + b_ref[...]).astype(slab_ref.dtype)


# --------------------------------------------------------------------------
# Stage 2 (B > FUSE_MAX): flash attention over key tiles with folded output
# --------------------------------------------------------------------------
def _flash_kernel(q_ref, k_ref, vp_ref, bol_ref, out_ref, m_sc, l_sc, acc_sc,
                  *, l_real, bf16_exp, masked):
    j = pl.program_id(1)
    tk = k_ref.shape[0]

    @pl.when(j == 0)
    def _init():
        m_sc[...] = jnp.full(m_sc.shape, -1e30, jnp.float32)
        l_sc[...] = jnp.zeros(l_sc.shape, jnp.float32)
        acc_sc[...] = jnp.zeros(acc_sc.shape, jnp.float32)

    q = q_ref[...]                                                     # (tq, 256) bf16, pre-scaled
    k = k_ref[...]                                                     # (tk, 256) bf16
    vp = vp_ref[...]                                                   # (tk, 128) bf16

    if masked:  # static: padding exists somewhere in the key range
        key_idx = j * tk + lax.broadcasted_iota(jnp.int32, (1, tk), 1)  # (1, tk)
        key_mask = key_idx < l_real
    else:
        key_mask = None

    for h in range(NUM_HEADS):                                         # static unroll, 4 heads
        lo = h * HEAD_DIM
        s = lax.dot_general(q[:, lo:lo + HEAD_DIM], k[:, lo:lo + HEAD_DIM],
                            (((1,), (1,)), ((), ())),
                            preferred_element_type=jnp.float32)        # (tq, tk)
        if key_mask is not None:
            s = jnp.where(key_mask, s, -1e30)

        m_prev = m_sc[:, h:h + 1]                                      # (tq, 1)
        m_new = jnp.maximum(m_prev, jnp.max(s, axis=-1, keepdims=True))
        alpha = jnp.exp(m_prev - m_new)
        if bf16_exp:
            p = jnp.exp((s - m_new).astype(jnp.bfloat16))
            row_sum = jnp.sum(p, axis=-1, keepdims=True, dtype=jnp.float32)
        else:
            p32 = jnp.exp(s - m_new)
            row_sum = jnp.sum(p32, axis=-1, keepdims=True)
            p = p32.astype(jnp.bfloat16)

        r = jnp.dot(p, vp, preferred_element_type=jnp.float32)[:, h:h + 1]   # (tq, 1)
        l_sc[:, h:h + 1] = alpha * l_sc[:, h:h + 1] + row_sum
        acc_sc[:, h:h + 1] = alpha * acc_sc[:, h:h + 1] + r
        m_sc[:, h:h + 1] = m_new

    @pl.when(j == pl.num_programs(1) - 1)
    def _finalize():
        total = jnp.zeros((out_ref.shape[0], 1), jnp.float32)
        for h in range(NUM_HEADS):
            total = total + acc_sc[:, h:h + 1] * pl.reciprocal(l_sc[:, h:h + 1], approx=True)
        out_ref[...] = total + bol_ref[0, 0]


# --------------------------------------------------------------------------
# Parameter folding (pure XLA in the wrapper)
# --------------------------------------------------------------------------
def _fold_params(params):
    scale = 1.0 / math.sqrt(HEAD_DIM)
    wol = (params["wo"] @ params["wl"]).reshape(EMBED)                  # (256,)
    bol = (params["bo"] @ params["wl"] + params["bl"]).reshape(1, 1)    # (1, 1)

    wv, bv = params["wv"], params["bv"]
    wvf_cols, bvf_cols = [], []
    for h in range(NUM_HEADS):
        sl = slice(h * HEAD_DIM, (h + 1) * HEAD_DIM)
        wvf_cols.append(wv[:, sl] @ wol[sl])                            # (256,)
        bvf_cols.append(jnp.dot(bv[0, sl], wol[sl]))                    # scalar
    wvf = jnp.pad(jnp.stack(wvf_cols, axis=1), ((0, 0), (0, VPAD - NUM_HEADS)))      # (256, 128)
    bvf = jnp.pad(jnp.stack(bvf_cols).reshape(1, NUM_HEADS), ((0, 0), (0, VPAD - NUM_HEADS)))

    w_all = jnp.concatenate([params["wq"] * scale, params["wk"], wvf], axis=1).astype(jnp.bfloat16)
    b_all = jnp.concatenate([params["bq"] * scale, params["bk"], bvf], axis=1).astype(jnp.float32)
    return w_all, b_all, bol.astype(jnp.float32)


# --------------------------------------------------------------------------
# Wrapper
# --------------------------------------------------------------------------
def self_attention_model(x, params):
    """x: (B, D) float32, D <= 256. Returns (B,) float32 (matches .squeeze())."""
    B, D = x.shape
    assert D <= EMBED, "module only supports feature dim <= 256"
    x = x.astype(jnp.float32)
    if D < EMBED:
        x = jnp.concatenate([x, jnp.zeros((B, EMBED - D), jnp.float32)], axis=-1)

    w_all, b_all, bol = _fold_params(params)
    bf16_exp = _use_bf16_exp()

    # ------------------------- fused path (small B) ------------------------
    if B <= FUSE_MAX:
        l_pad = max(_round_up(B, 16), 16)
        if l_pad > B:
            x = jnp.concatenate([x, jnp.zeros((l_pad - B, EMBED), jnp.float32)], axis=0)
        x_bf = x.astype(jnp.bfloat16)

        vmem_need = (2 * l_pad * EMBED * 2 + 2 * EMBED * SLAB * 2 + 2 * SLAB * 4
                     + 2 * l_pad * 4 + 6 * l_pad * SLAB + 6 * l_pad * l_pad * 4)
        vmem_limit = int(min(max(vmem_need + (4 << 20), 16 << 20), 40 << 20))

        flops = 2 * l_pad * EMBED * SLAB + NUM_HEADS * 2 * l_pad * l_pad * (HEAD_DIM + VPAD)
        cost = pl.CostEstimate(
            flops=int(flops),
            transcendentals=int(NUM_HEADS * l_pad * l_pad),
            bytes_accessed=int(l_pad * EMBED * 2 + EMBED * SLAB * 2 + SLAB * 4 + l_pad * 4))

        out = pl.pallas_call(
            functools.partial(_fused_kernel, l_real=B, bf16_exp=bf16_exp),
            out_shape=jax.ShapeDtypeStruct((l_pad, 1), jnp.float32),
            grid=(1,),
            in_specs=[
                pl.BlockSpec((l_pad, EMBED), lambda i: (0, 0)),          # x
                pl.BlockSpec((EMBED, SLAB), lambda i: (0, 0)),           # fused weights
                pl.BlockSpec((1, SLAB), lambda i: (0, 0)),               # fused bias (f32)
                pl.BlockSpec(memory_space=pltpu.MemorySpace.SMEM),       # folded bias scalar
            ],
            out_specs=pl.BlockSpec((l_pad, 1), lambda i: (0, 0)),
            compiler_params=pltpu.CompilerParams(
                dimension_semantics=("arbitrary",),
                vmem_limit_bytes=vmem_limit),
            cost_estimate=cost,
        )(x_bf, w_all, b_all, bol)
        return out[:B, 0]

    # --------------------- two-stage flash path (large B) ------------------
    tq = 256
    l_pad = _round_up(B, tq)
    tk = 512 if l_pad % 512 == 0 else 256
    if l_pad > B:
        x = jnp.concatenate([x, jnp.zeros((l_pad - B, EMBED), jnp.float32)], axis=0)
    x_bf = x.astype(jnp.bfloat16)

    # stage 1: slab = x @ [wq*scale | wk | wv_fold] + bias  (bf16, row-tiled)
    slab = pl.pallas_call(
        _proj_kernel,
        out_shape=jax.ShapeDtypeStruct((l_pad, SLAB), jnp.bfloat16),
        grid=(l_pad // tq,),
        in_specs=[
            pl.BlockSpec((tq, EMBED), lambda i: (i, 0)),
            pl.BlockSpec((EMBED, SLAB), lambda i: (0, 0)),
            pl.BlockSpec((1, SLAB), lambda i: (0, 0)),
        ],
        out_specs=pl.BlockSpec((tq, SLAB), lambda i: (i, 0)),
        compiler_params=pltpu.CompilerParams(
            dimension_semantics=("parallel",),
            vmem_limit_bytes=32 * 1024 * 1024),
    )(x_bf, w_all, b_all)

    # stage 2: flash attention over key tiles, per-head online softmax in scratch
    n_q, n_k = l_pad // tq, l_pad // tk
    blk_bytes = 2 * tq * EMBED * 2 + 2 * tk * EMBED * 2 + 2 * tk * VPAD * 2 + 2 * tq * 4
    scratch_bytes = 3 * tq * 128 * 4
    tmp_bytes = 8 * tq * tk * 4                                         # s/p/select temporaries
    vmem_limit2 = int(min(max(blk_bytes + scratch_bytes + tmp_bytes + (4 << 20), 16 << 20), 40 << 20))

    cost2 = pl.CostEstimate(
        flops=int(NUM_HEADS * 2 * l_pad * l_pad * (HEAD_DIM + VPAD)),
        transcendentals=int(NUM_HEADS * l_pad * l_pad),
        bytes_accessed=int(n_q * l_pad * (EMBED + VPAD) * 2 + l_pad * EMBED * 2 + l_pad * 4))

    out = pl.pallas_call(
        functools.partial(_flash_kernel, l_real=B, bf16_exp=bf16_exp, masked=(l_pad > B)),
        out_shape=jax.ShapeDtypeStruct((l_pad, 1), jnp.float32),
        grid=(n_q, n_k),
        in_specs=[
            pl.BlockSpec((tq, EMBED), lambda i, j: (i, 0)),              # Q tile   (slab cols   0:256)
            pl.BlockSpec((tk, EMBED), lambda i, j: (j, 1)),              # K tile   (slab cols 256:512)
            pl.BlockSpec((tk, VPAD), lambda i, j: (j, 4)),               # folded V (slab cols 512:640)
            pl.BlockSpec(memory_space=pltpu.MemorySpace.SMEM),           # folded bias scalar
        ],
        out_specs=pl.BlockSpec((tq, 1), lambda i, j: (i, 0)),
        scratch_shapes=[
            pltpu.VMEM((tq, NUM_HEADS), jnp.float32),                    # running max  (per head)
            pltpu.VMEM((tq, NUM_HEADS), jnp.float32),                    # running denom
            pltpu.VMEM((tq, NUM_HEADS), jnp.float32),                    # running folded accumulator
        ],
        compiler_params=pltpu.CompilerParams(
            dimension_semantics=("parallel", "arbitrary"),
            vmem_limit_bytes=vmem_limit2),
        cost_estimate=cost2,
    )(slab, slab, slab, bol)
    return out[:B, 0]


# --------------------------------------------------------------------------
# Synthetic parameters + pure-JAX reference
# --------------------------------------------------------------------------
def make_params(key):
    """nn.MultiheadAttention(256,4) + nn.Linear(256,1) shapes; weights stored
    pre-transposed so y = x @ W + b."""
    ks = jax.random.split(key, 6)
    s = 1.0 / math.sqrt(EMBED)
    return {
        "wq": jax.random.normal(ks[0], (EMBED, EMBED), jnp.float32) * s,
        "wk": jax.random.normal(ks[1], (EMBED, EMBED), jnp.float32) * s,
        "wv": jax.random.normal(ks[2], (EMBED, EMBED), jnp.float32) * s,
        "bq": jnp.zeros((1, EMBED), jnp.float32),
        "bk": jnp.zeros((1, EMBED), jnp.float32),
        "bv": jnp.zeros((1, EMBED), jnp.float32),
        "wo": jax.random.normal(ks[3], (EMBED, EMBED), jnp.float32) * s,
        "bo": jax.random.normal(ks[4], (1, EMBED), jnp.float32) * 0.01,
        "wl": jax.random.normal(ks[5], (EMBED, 1), jnp.float32) * s,
        "bl": jnp.full((1, 1), 0.1, jnp.float32),
    }


def _reference(x, p):
    """Pure-JAX f32 reference of the same forward pass (no folding)."""
    B, D = x.shape
    if D < EMBED:
        x = jnp.concatenate([x, jnp.zeros((B, EMBED - D), x.dtype)], axis=-1)
    q = x @ p["wq"] + p["bq"]
    k = x @ p["wk"] + p["bk"]
    v = x @ p["wv"] + p["bv"]
    qh = q.reshape(B, NUM_HEADS, HEAD_DIM).transpose(1, 0, 2)
    kh = k.reshape(B, NUM_HEADS, HEAD_DIM).transpose(1, 0, 2)
    vh = v.reshape(B, NUM_HEADS, HEAD_DIM).transpose(1, 0, 2)
    s = jnp.einsum("hqd,hkd->hqk", qh, kh) / math.sqrt(HEAD_DIM)
    a = jax.nn.softmax(s, axis=-1)
    o = jnp.einsum("hqk,hkd->hqd", a, vh).transpose(1, 0, 2).reshape(B, EMBED)
    o = o @ p["wo"] + p["bo"]
    y = o @ p["wl"] + p["bl"]
    return y[:, 0]


if __name__ == "__main__":
    key = jax.random.PRNGKey(0)
    k_x, k_p, k_x2 = jax.random.split(key, 3)
    params = make_params(k_p)

    # Small shapes implied by the forward: x is (batch, features), features < 256.
    B, D = 8, 32
    x = jax.random.normal(k_x, (B, D), jnp.float32)
    y = jax.block_until_ready(self_attention_model(x, params))
    y_ref = _reference(x, params)
    assert y.shape == (B,)
    # bf16 MXU path + approx reciprocal -> relaxed tolerance vs f32 reference.
    assert jnp.allclose(y, y_ref, atol=5e-2, rtol=5e-2), (y, y_ref)

    # Also exercise the two-stage flash path (key tiling + query-parallel grid).
    B2 = 600
    x2 = jax.random.normal(k_x2, (B2, D), jnp.float32)
    y2 = jax.block_until_ready(self_attention_model(x2, params))
    y2_ref = _reference(x2, params)
    assert y2.shape == (B2,)
    assert jnp.allclose(y2, y2_ref, atol=5e-2, rtol=5e-2), (y2, y2_ref)

    print("KERNEL_OK")
</pallas_src>

<mosaic_0001>
module attributes {stable_mosaic.version = 11 : i64} {
  func.func @_fused_kernel(%arg0: i32, %arg1: memref<16x256xbf16, #tpu.memory_space<vmem>>, %arg2: memref<256x640xbf16, #tpu.memory_space<vmem>>, %arg3: memref<1x640xf32, #tpu.memory_space<vmem>>, %arg4: memref<1x1xf32, #tpu.memory_space<smem>>, %arg5: memref<16x1xf32, #tpu.memory_space<vmem>>) attributes {dimension_semantics = [#tpu.dimension_semantics<arbitrary>], iteration_bounds = array<i64: 1>, scalar_prefetch = 0 : i64, scratch_operands = 0 : i64, tpu.core_type = #tpu.core_type<tc>, window_params = [{pipeline_mode = #tpu.pipeline_mode<synchronous>, transform_indices = @transform_0, window_bounds = array<i64: 16, 256>}, {pipeline_mode = #tpu.pipeline_mode<synchronous>, transform_indices = @transform_1, window_bounds = array<i64: 256, 640>}, {pipeline_mode = #tpu.pipeline_mode<synchronous>, transform_indices = @transform_2, window_bounds = array<i64: 1, 640>}, {transform_indices = @transform_3, window_bounds = array<i64: 1, 1>}, {pipeline_mode = #tpu.pipeline_mode<synchronous>, transform_indices = @transform_4, window_bounds = array<i64: 16, 1>}]} {
    %c0 = arith.constant 0 : index
    %c0_0 = arith.constant 0 : index
    %0 = vector.load %arg1[%c0, %c0_0] : memref<16x256xbf16, #tpu.memory_space<vmem>>, vector<16x256xbf16>
    %c0_1 = arith.constant 0 : index
    %c0_2 = arith.constant 0 : index
    %1 = vector.load %arg2[%c0_1, %c0_2] : memref<256x640xbf16, #tpu.memory_space<vmem>>, vector<256x640xbf16>
    %cst = arith.constant dense<0.000000e+00> : vector<16x640xf32>
    %2 = tpu.matmul %0, %1, %cst {dimension_numbers = #tpu.dot_dimension_numbers<[1], [0], [0], [1], [0, 0, 1, 1], [], []>} : vector<16x256xbf16>, vector<256x640xbf16>, vector<16x640xf32> -> vector<16x640xf32>
    %c0_3 = arith.constant 0 : index
    %c0_4 = arith.constant 0 : index
    %3 = vector.load %arg3[%c0_3, %c0_4] : memref<1x640xf32, #tpu.memory_space<vmem>>, vector<1x640xf32>
    %4 = vector.broadcast %3 : vector<1x640xf32> to vector<16x640xf32>
    %5 = arith.addf %2, %4 : vector<16x640xf32>
    %6 = vector.extract_strided_slice %5 {offsets = [0, 0], sizes = [16, 256], strides = [1, 1]} : vector<16x640xf32> to vector<16x256xf32>
    %7 = arith.truncf %6 : vector<16x256xf32> to vector<16x256xbf16>
    %8 = vector.extract_strided_slice %5 {offsets = [0, 256], sizes = [16, 256], strides = [1, 1]} : vector<16x640xf32> to vector<16x256xf32>
    %9 = arith.truncf %8 : vector<16x256xf32> to vector<16x256xbf16>
    %10 = vector.extract_strided_slice %5 {offsets = [0, 512], sizes = [16, 128], strides = [1, 1]} : vector<16x640xf32> to vector<16x128xf32>
    %11 = arith.truncf %10 : vector<16x128xf32> to vector<16x128xbf16>
    %12 = tpu.iota {dimensions = array<i32: 1>} : vector<1x16xi32>
    %c8_i32 = arith.constant 8 : i32
    %13 = vector.broadcast %c8_i32 : i32 to vector<1x16xi32>
    %14 = arith.cmpi slt, %12, %13 : vector<1x16xi32>
    %cst_5 = arith.constant 0.000000e+00 : f32
    %15 = vector.broadcast %cst_5 : f32 to vector<16x1xf32>
    %16 = vector.extract_strided_slice %7 {offsets = [0, 0], sizes = [16, 64], strides = [1, 1]} : vector<16x256xbf16> to vector<16x64xbf16>
    %17 = vector.extract_strided_slice %9 {offsets = [0, 0], sizes = [16, 64], strides = [1, 1]} : vector<16x256xbf16> to vector<16x64xbf16>
    %cst_6 = arith.constant dense<0.000000e+00> : vector<16x16xf32>
    %18 = tpu.matmul %16, %17, %cst_6 {dimension_numbers = #tpu.dot_dimension_numbers<[1], [1], [0], [0], [0, 0, 1, 0], [], []>} : vector<16x64xbf16>, vector<16x64xbf16>, vector<16x16xf32> -> vector<16x16xf32>
    %cst_7 = arith.constant -1.000000e+30 : f32
    %19 = vector.shape_cast %14 : vector<1x16xi1> to vector<1x16xi1>
    %20 = vector.broadcast %19 : vector<1x16xi1> to vector<16x16xi1>
    %21 = vector.broadcast %cst_7 : f32 to vector<16x16xf32>
    %22 = arith.select %20, %18, %21 : vector<16x16xi1>, vector<16x16xf32>
    %cst_8 = arith.constant dense<0xFF800000> : vector<16xf32>
    %23 = vector.multi_reduction <maximumf>, %22, %cst_8 [1] : vector<16x16xf32> to vector<16xf32>
    %24 = vector.shape_cast %23 : vector<16xf32> to vector<16x1xf32>
    %25 = vector.broadcast %24 : vector<16x1xf32> to vector<16x16xf32>
    %26 = arith.subf %22, %25 : vector<16x16xf32>
    %27 = math.exp %26 : vector<16x16xf32>
    %cst_9 = arith.constant dense<0.000000e+00> : vector<16xf32>
    %28 = vector.multi_reduction <add>, %27, %cst_9 [1] : vector<16x16xf32> to vector<16xf32>
    %29 = vector.shape_cast %28 : vector<16xf32> to vector<16x1xf32>
    %30 = arith.truncf %27 : vector<16x16xf32> to vector<16x16xbf16>
    %cst_10 = arith.constant dense<0.000000e+00> : vector<16x128xf32>
    %31 = tpu.matmul %30, %11, %cst_10 {dimension_numbers = #tpu.dot_dimension_numbers<[1], [0], [0], [1], [0, 0, 1, 1], [], []>} : vector<16x16xbf16>, vector<16x128xbf16>, vector<16x128xf32> -> vector<16x128xf32>
    %32 = vector.extract_strided_slice %31 {offsets = [0, 0], sizes = [16, 1], strides = [1, 1]} : vector<16x128xf32> to vector<16x1xf32>
    %33 = tpu.reciprocal %29 {approx = true} : vector<16x1xf32> -> vector<16x1xf32>
    %34 = arith.mulf %32, %33 : vector<16x1xf32>
    %35 = arith.addf %15, %34 : vector<16x1xf32>
    %36 = vector.extract_strided_slice %7 {offsets = [0, 64], sizes = [16, 64], strides = [1, 1]} : vector<16x256xbf16> to vector<16x64xbf16>
    %37 = vector.extract_strided_slice %9 {offsets = [0, 64], sizes = [16, 64], strides = [1, 1]} : vector<16x256xbf16> to vector<16x64xbf16>
    %cst_11 = arith.constant dense<0.000000e+00> : vector<16x16xf32>
    %38 = tpu.matmul %36, %37, %cst_11 {dimension_numbers = #tpu.dot_dimension_numbers<[1], [1], [0], [0], [0, 0, 1, 0], [], []>} : vector<16x64xbf16>, vector<16x64xbf16>, vector<16x16xf32> -> vector<16x16xf32>
    %cst_12 = arith.constant -1.000000e+30 : f32
    %39 = vector.shape_cast %14 : vector<1x16xi1> to vector<1x16xi1>
    %40 = vector.broadcast %39 : vector<1x16xi1> to vector<16x16xi1>
    %41 = vector.broadcast %cst_12 : f32 to vector<16x16xf32>
    %42 = arith.select %40, %38, %41 : vector<16x16xi1>, vector<16x16xf32>
    %cst_13 = arith.constant dense<0xFF800000> : vector<16xf32>
    %43 = vector.multi_reduction <maximumf>, %42, %cst_13 [1] : vector<16x16xf32> to vector<16xf32>
    %44 = vector.shape_cast %43 : vector<16xf32> to vector<16x1xf32>
    %45 = vector.broadcast %44 : vector<16x1xf32> to vector<16x16xf32>
    %46 = arith.subf %42, %45 : vector<16x16xf32>
    %47 = math.exp %46 : vector<16x16xf32>
    %cst_14 = arith.constant dense<0.000000e+00> : vector<16xf32>
    %48 = vector.multi_reduction <add>, %47, %cst_14 [1] : vector<16x16xf32> to vector<16xf32>
    %49 = vector.shape_cast %48 : vector<16xf32> to vector<16x1xf32>
    %50 = arith.truncf %47 : vector<16x16xf32> to vector<16x16xbf16>
    %cst_15 = arith.constant dense<0.000000e+00> : vector<16x128xf32>
    %51 = tpu.matmul %50, %11, %cst_15 {dimension_numbers = #tpu.dot_dimension_numbers<[1], [0], [0], [1], [0, 0, 1, 1], [], []>} : vector<16x16xbf16>, vector<16x128xbf16>, vector<16x128xf32> -> vector<16x128xf32>
    %52 = vector.extract_strided_slice %51 {offsets = [0, 1], sizes = [16, 1], strides = [1, 1]} : vector<16x128xf32> to vector<16x1xf32>
    %53 = tpu.reciprocal %49 {approx = true} : vector<16x1xf32> -> vector<16x1xf32>
    %54 = arith.mulf %52, %53 : vector<16x1xf32>
    %55 = arith.addf %35, %54 : vector<16x1xf32>
    %56 = vector.extract_strided_slice %7 {offsets = [0, 128], sizes = [16, 64], strides = [1, 1]} : vector<16x256xbf16> to vector<16x64xbf16>
    %57 = vector.extract_strided_slice %9 {offsets = [0, 128], sizes = [16, 64], strides = [1, 1]} : vector<16x256xbf16> to vector<16x64xbf16>
    %cst_16 = arith.constant dense<0.000000e+00> : vector<16x16xf32>
    %58 = tpu.matmul %56, %57, %cst_16 {dimension_numbers = #tpu.dot_dimension_numbers<[1], [1], [0], [0], [0, 0, 1, 0], [], []>} : vector<16x64xbf16>, vector<16x64xbf16>, vector<16x16xf32> -> vector<16x16xf32>
    %cst_17 = arith.constant -1.000000e+30 : f32
    %59 = vector.shape_cast %14 : vector<1x16xi1> to vector<1x16xi1>
    %60 = vector.broadcast %59 : vector<1x16xi1> to vector<16x16xi1>
    %61 = vector.broadcast %cst_17 : f32 to vector<16x16xf32>
    %62 = arith.select %60, %58, %61 : vector<16x16xi1>, vector<16x16xf32>
    %cst_18 = arith.constant dense<0xFF800000> : vector<16xf32>
    %63 = vector.multi_reduction <maximumf>, %62, %cst_18 [1] : vector<16x16xf32> to vector<16xf32>
    %64 = vector.shape_cast %63 : vector<16xf32> to vector<16x1xf32>
    %65 = vector.broadcast %64 : vector<16x1xf32> to vector<16x16xf32>
    %66 = arith.subf %62, %65 : vector<16x16xf32>
    %67 = math.exp %66 : vector<16x16xf32>
    %cst_19 = arith.constant dense<0.000000e+00> : vector<16xf32>
    %68 = vector.multi_reduction <add>, %67, %cst_19 [1] : vector<16x16xf32> to vector<16xf32>
    %69 = vector.shape_cast %68 : vector<16xf32> to vector<16x1xf32>
    %70 = arith.truncf %67 : vector<16x16xf32> to vector<16x16xbf16>
    %cst_20 = arith.constant dense<0.000000e+00> : vector<16x128xf32>
    %71 = tpu.matmul %70, %11, %cst_20 {dimension_numbers = #tpu.dot_dimension_numbers<[1], [0], [0], [1], [0, 0, 1, 1], [], []>} : vector<16x16xbf16>, vector<16x128xbf16>, vector<16x128xf32> -> vector<16x128xf32>
    %72 = vector.extract_strided_slice %71 {offsets = [0, 2], sizes = [16, 1], strides = [1, 1]} : vector<16x128xf32> to vector<16x1xf32>
    %73 = tpu.reciprocal %69 {approx = true} : vector<16x1xf32> -> vector<16x1xf32>
    %74 = arith.mulf %72, %73 : vector<16x1xf32>
    %75 = arith.addf %55, %74 : vector<16x1xf32>
    %76 = vector.extract_strided_slice %7 {offsets = [0, 192], sizes = [16, 64], strides = [1, 1]} : vector<16x256xbf16> to vector<16x64xbf16>
    %77 = vector.extract_strided_slice %9 {offsets = [0, 192], sizes = [16, 64], strides = [1, 1]} : vector<16x256xbf16> to vector<16x64xbf16>
    %cst_21 = arith.constant dense<0.000000e+00> : vector<16x16xf32>
    %78 = tpu.matmul %76, %77, %cst_21 {dimension_numbers = #tpu.dot_dimension_numbers<[1], [1], [0], [0], [0, 0, 1, 0], [], []>} : vector<16x64xbf16>, vector<16x64xbf16>, vector<16x16xf32> -> vector<16x16xf32>
    %cst_22 = arith.constant -1.000000e+30 : f32
    %79 = vector.shape_cast %14 : vector<1x16xi1> to vector<1x16xi1>
    %80 = vector.broadcast %79 : vector<1x16xi1> to vector<16x16xi1>
    %81 = vector.broadcast %cst_22 : f32 to vector<16x16xf32>
    %82 = arith.select %80, %78, %81 : vector<16x16xi1>, vector<16x16xf32>
    %cst_23 = arith.constant dense<0xFF800000> : vector<16xf32>
    %83 = vector.multi_reduction <maximumf>, %82, %cst_23 [1] : vector<16x16xf32> to vector<16xf32>
    %84 = vector.shape_cast %83 : vector<16xf32> to vector<16x1xf32>
    %85 = vector.broadcast %84 : vector<16x1xf32> to vector<16x16xf32>
    %86 = arith.subf %82, %85 : vector<16x16xf32>
    %87 = math.exp %86 : vector<16x16xf32>
    %cst_24 = arith.constant dense<0.000000e+00> : vector<16xf32>
    %88 = vector.multi_reduction <add>, %87, %cst_24 [1] : vector<16x16xf32> to vector<16xf32>
    %89 = vector.shape_cast %88 : vector<16xf32> to vector<16x1xf32>
    %90 = arith.truncf %87 : vector<16x16xf32> to vector<16x16xbf16>
    %cst_25 = arith.constant dense<0.000000e+00> : vector<16x128xf32>
    %91 = tpu.matmul %90, %11, %cst_25 {dimension_numbers = #tpu.dot_dimension_numbers<[1], [0], [0], [1], [0, 0, 1, 1], [], []>} : vector<16x16xbf16>, vector<16x128xbf16>, vector<16x128xf32> -> vector<16x128xf32>
    %92 = vector.extract_strided_slice %91 {offsets = [0, 3], sizes = [16, 1], strides = [1, 1]} : vector<16x128xf32> to vector<16x1xf32>
    %93 = tpu.reciprocal %89 {approx = true} : vector<16x1xf32> -> vector<16x1xf32>
    %94 = arith.mulf %92, %93 : vector<16x1xf32>
    %95 = arith.addf %75, %94 : vector<16x1xf32>
    %c0_26 = arith.constant 0 : index
    %c0_27 = arith.constant 0 : index
    %96 = memref.load %arg4[%c0_26, %c0_27] : memref<1x1xf32, #tpu.memory_space<smem>>
    %97 = vector.broadcast %96 : f32 to vector<16x1xf32>
    %98 = arith.addf %95, %97 : vector<16x1xf32>
    %c0_28 = arith.constant 0 : index
    %c0_29 = arith.constant 0 : index
    %99 = vector.load %arg5[%c0_28, %c0_29] : memref<16x1xf32, #tpu.memory_space<vmem>>, vector<16x1xf32>
    tpu.vector_store %arg5[%c0_28, %c0_29], %98 {strides = array<i32>} : memref<16x1xf32, #tpu.memory_space<vmem>>, vector<16x1xf32>,
    return
  }
  func.func @transform_0(%arg0: i32) -> (i32, i32) {
    %c0_i32 = arith.constant 0 : i32
    %c0_i32_0 = arith.constant 0 : i32
    %c0_i32_1 = arith.constant 0 : i32
    return %c0_i32, %c0_i32_0 : i32, i32
  }
  func.func @transform_1(%arg0: i32) -> (i32, i32) {
    %c0_i32 = arith.constant 0 : i32
    %c0_i32_0 = arith.constant 0 : i32
    %c0_i32_1 = arith.constant 0 : i32
    return %c0_i32, %c0_i32_0 : i32, i32
  }
  func.func @transform_2(%arg0: i32) -> (i32, i32) {
    %c0_i32 = arith.constant 0 : i32
    %c0_i32_0 = arith.constant 0 : i32
    %c0_i32_1 = arith.constant 0 : i32
    return %c0_i32, %c0_i32_0 : i32, i32
  }
  func.func @transform_3(%arg0: i32) -> (i32, i32) {
    %c0_i32 = arith.constant 0 : i32
    %c0_i32_0 = arith.constant 0 : i32
    %c0_i32_1 = arith.constant 0 : i32
    return %c0_i32, %c0_i32_0 : i32, i32
  }
  func.func @transform_4(%arg0: i32) -> (i32, i32) {
    %c0_i32 = arith.constant 0 : i32
    %c0_i32_0 = arith.constant 0 : i32
    %c0_i32_1 = arith.constant 0 : i32
    return %c0_i32, %c0_i32_0 : i32, i32
  }
}

</mosaic_0001>

<bundles_post_ra>
// kernel: tpu_custom_call.1
= control target key start
LH: loop header
LB: loop body
LE: loop exit
PB: predicated region body
PF: predicated region fallthrough
CT: control target
= control target key end

     0   :  { %10 = vsyncpa [#allocation4], 0  ;;  %s1728_s0 = inlined_call_operand.hbm [shape: bf16[16,256], index: 0, kind: input, shape index: {}]   ;;  %s1729_s1 = inlined_call_operand.hbm [shape: bf16[256,640], index: 1, kind: input, shape index: {}]   ;;  %s1730_s2 = inlined_call_operand.hbm [shape: f32[1,640], index: 2, kind: input, shape index: {}]   ;;  %s1731_s3 = inlined_call_operand.<no memory space> [shape: f32[1,1], index: 3, kind: input, shape index: {}]   ;;  %s1732_s4 = inlined_call_operand.vmem [shape: f32[16,1], index: 4, kind: output, shape index: {}]  }
   0x1   :  { %11 = vsyncpa [#allocation6], 0  ;;  %s29_s17 = sshll.u32 %s1729_s1, 4  ;;  %s1606_s18 = smov [#allocation5]   ;;  %s30_s17 = int_to_ptr.hbm [resolvable:$true] %s29_s17 }
   0x2   :  { %s31_s19 = sshll.u32 %s1606_s18, 4  ;;  %s16_s22 = sshll.u32 %s1728_s0, 4  ;;  %s32_s19 = int_to_ptr.vmem [resolvable:$true] %s31_s19  ;;  %s17_s22 = int_to_ptr.hbm [resolvable:$true] %s16_s22 }
   0x3   :  { %s1607_s23 = smov 320   ;;  %s1608_s24 = smov 20  }
   0x4   :  { %37 = dma.hbm_to_vmem [thread:$0]  %s30_s17, 10240, %s32_s19, [#allocation6], %s1607_s23, %s1607_s23, %s1608_s24  }
   0x5   :  { %s1609_s25 = smov [#allocation3]   ;;  %s1610_s27 = smov 128  }
   0x6   :  { %s18_s26 = sshll.u32 %s1609_s25, 4  ;;  %s1611_s28 = smov 8   ;;  %s19_s26 = int_to_ptr.vmem [resolvable:$true] %s18_s26 }
   0x7   :  { %24 = dma.hbm_to_vmem [thread:$0]  %s17_s22, 256, %s19_s26, [#allocation4], %s1610_s27, %s1610_s27, %s1611_s28  }
   0x8   :  { %s43_s30 = sshll.u32 %s1730_s2, 4  ;;  %s1612_s5 = smov [#allocation7]   ;;  %s44_s30 = int_to_ptr.hbm [resolvable:$true] %s43_s30 }
   0x9   :  { %s45_s6 = sshll.u32 %s1612_s5, 4  ;;  %s46_s6 = int_to_ptr.vmem [resolvable:$true] %s45_s6 }
   0xa   :  { %48 = dma.hbm_to_vmem [thread:$0]  %s44_s30, 80, %s46_s6, [#allocation6]  }
   0xb   :  { %1602 = dma.done.wait [#allocation4], 256  }
   0xc   :  { %1603 = vsyncadd [#allocation4], 4294967040 }
   0xd   :  { %1604 = dma.done.wait [#allocation6], 10320  }
   0xe   :  { %1605 = vsyncadd [#allocation6], 4294956976  ;;  %v1219_v0 = vld [vmem:[#allocation5 + $0x118] sm:$0xf]  ;;  %v1444_v1 = vld [vmem:[#allocation5 + $0x128] sm:$0xf0] }
   0xf   :  { %v1379_v2 = vld [vmem:[#allocation5 + $0x258] sm:$0xf]  ;;  %v1220_v3 = vor.u32 %v1444_v1, %v1219_v0  ;;  %v1484_v4 = vld [vmem:[#allocation5 + $0x268] sm:$0xf0]  ;;  %v1442_v5 = vld [vmem:[#allocation5 + $0x11c] sm:$0xf] }
  0x10   :  { %v1221_v6 = vld [vmem:[#allocation5 + $0x12c] sm:$0xf0]  ;;  %v1380_v7 = vor.u32 %v1484_v4, %v1379_v2  ;;  %v1482_v9 = vld [vmem:[#allocation5 + $0x25c] sm:$0xf]  ;;  %v1439_v13 = vld [vmem:[#allocation5 + $0x100] sm:$0xf0] }
  0x11   :  { %v1224_v8 = vor.u32 %v1442_v5, %v1221_v6  ;;  %v1381_v10 = vld [vmem:[#allocation5 + $0x26c] sm:$0xf0]  ;;  %600 = vmatpush.bf16.msra.mxu0 %v1220_v3  ;;  %v1479_v15 = vld [vmem:[#allocation5 + $0x240] sm:$0xf0]  ;;  %v1437_v18 = vld [vmem:[#allocation5 + $0xf4] sm:$0xf] }
  0x12   :  { %v1199_v11 = vld [vmem:[#allocation5 + $0xf0] sm:$0xf]  ;;  %v1384_v12 = vor.u32 %v1482_v9, %v1381_v10  ;;  %614 = vmatpush.bf16.msra.mxu1 %v1380_v7  ;;  %v1201_v19 = vld [vmem:[#allocation5 + $0x104] sm:$0xf0]  ;;  %v1477_v20 = vld [vmem:[#allocation5 + $0x234] sm:$0xf] }
  0x13   :  { %v1359_v14 = vld [vmem:[#allocation5 + $0x230] sm:$0xf]  ;;  %628 = vmatpush.bf16.msra.mxu2 %v1224_v8  ;;  %v1200_v16 = vor.u32 %v1439_v13, %v1199_v11  ;;  %v1204_v21 = vor.u32 %v1437_v18, %v1201_v19  ;;  %v1361_v22 = vld [vmem:[#allocation5 + $0x244] sm:$0xf0]  ;;  %v1434_v24 = vld [vmem:[#allocation5 + $0xd8] sm:$0xf0] }
  0x14   :  { %v1360_v17 = vor.u32 %v1479_v15, %v1359_v14  ;;  %642 = vmatpush.bf16.msra.mxu3 %v1384_v12  ;;  %v1179_v23 = vld [vmem:[#allocation5 + $0xc8] sm:$0xf]  ;;  %v1364_v25 = vor.u32 %v1477_v20, %v1361_v22  ;;  %v1474_v27 = vld [vmem:[#allocation5 + $0x218] sm:$0xf0]  ;;  %v1432_v28 = vld [vmem:[#allocation5 + $0xcc] sm:$0xf] }
  0x15   :  { %v1339_v26 = vld [vmem:[#allocation5 + $0x208] sm:$0xf]  ;;  %601 = vmatpush.bf16.msra.mxu0 %v1200_v16  ;;  %v1180_v29 = vor.u32 %v1434_v24, %v1179_v23  ;;  %v1181_v30 = vld [vmem:[#allocation5 + $0xdc] sm:$0xf0]  ;;  %v1472_v31 = vld [vmem:[#allocation5 + $0x20c] sm:$0xf] }
  0x16   :  { %v1341_v32 = vld [vmem:[#allocation5 + $0x21c] sm:$0xf0]  ;;  %615 = vmatpush.bf16.msra.mxu1 %v1360_v17  ;;  %v1340_v33 = vor.u32 %v1474_v27, %v1339_v26  ;;  %v1184_v34 = vor.u32 %v1432_v28, %v1181_v30  ;;  %v1429_v36 = vld [vmem:[#allocation5 + $0xb0] sm:$0xf0]  ;;  %v1427_v40 = vld [vmem:[#allocation5 + $0xa4] sm:$0xf] }
  0x17   :  { %629 = vmatpush.bf16.msra.mxu2 %v1204_v21  ;;  %v1159_v35 = vld [vmem:[#allocation5 + $0xa0] sm:$0xf]  ;;  %v1344_v38 = vor.u32 %v1472_v31, %v1341_v32  ;;  %v1469_v39 = vld [vmem:[#allocation5 + $0x1f0] sm:$0xf0]  ;;  %v1161_v41 = vld [vmem:[#allocation5 + $0xb4] sm:$0xf0] }
  0x18   :  { %v1319_v37 = vld [vmem:[#allocation5 + $0x1e0] sm:$0xf]  ;;  %643 = vmatpush.bf16.msra.mxu3 %v1364_v25  ;;  %v1467_v42 = vld [vmem:[#allocation5 + $0x1e4] sm:$0xf]  ;;  %v1321_v43 = vld [vmem:[#allocation5 + $0x1f4] sm:$0xf0]  ;;  %v1160_v44 = vor.u32 %v1429_v36, %v1159_v35  ;;  %v1164_v46 = vor.u32 %v1427_v40, %v1161_v41 }
  0x19   :  { %602 = vmatpush.bf16.msra.mxu0 %v1180_v29  ;;  %v1320_v45 = vor.u32 %v1469_v39, %v1319_v37  ;;  %v1139_v47 = vld [vmem:[#allocation5 + $0x78] sm:$0xf]  ;;  %v1424_v48 = vld [vmem:[#allocation5 + $0x88] sm:$0xf0]  ;;  %v1324_v50 = vor.u32 %v1467_v42, %v1321_v43  ;;  %v1422_v52 = vld [vmem:[#allocation5 + $0x7c] sm:$0xf] }
  0x1a   :  { %616 = vmatpush.bf16.msra.mxu1 %v1340_v33  ;;  %v1299_v49 = vld [vmem:[#allocation5 + $0x1b8] sm:$0xf]  ;;  %v1464_v51 = vld [vmem:[#allocation5 + $0x1c8] sm:$0xf0]  ;;  %v1141_v53 = vld [vmem:[#allocation5 + $0x8c] sm:$0xf0]  ;;  %v1140_v56 = vor.u32 %v1424_v48, %v1139_v47 }
  0x1b   :  { %630 = vmatpush.bf16.msra.mxu2 %v1184_v34  ;;  %v1462_v54 = vld [vmem:[#allocation5 + $0x1bc] sm:$0xf]  ;;  %v1301_v55 = vld [vmem:[#allocation5 + $0x1cc] sm:$0xf0]  ;;  %v1300_v57 = vor.u32 %v1464_v51, %v1299_v49  ;;  %v1144_v58 = vor.u32 %v1422_v52, %v1141_v53  ;;  %v1419_v60 = vld [vmem:[#allocation5 + $0x60] sm:$0xf0] }
  0x1c   :  { %644 = vmatpush.bf16.msra.mxu3 %v1344_v38  ;;  %v1119_v59 = vld [vmem:[#allocation5 + $0x50] sm:$0xf]  ;;  %v1304_v62 = vor.u32 %v1462_v54, %v1301_v55  ;;  %v1459_v63 = vld [vmem:[#allocation5 + $0x1a0] sm:$0xf0]  ;;  %v1417_v0 = vld [vmem:[#allocation5 + $0x54] sm:$0xf] }
  0x1d   :  { %603 = vmatpush.bf16.msra.mxu0 %v1160_v44  ;;  %v1279_v61 = vld [vmem:[#allocation5 + $0x190] sm:$0xf]  ;;  %v1121_v1 = vld [vmem:[#allocation5 + $0x64] sm:$0xf0]  ;;  %v1457_v2 = vld [vmem:[#allocation5 + $0x194] sm:$0xf]  ;;  %v1120_v4 = vor.u32 %v1419_v60, %v1119_v59 }
  0x1e   :  { %617 = vmatpush.bf16.msra.mxu1 %v1320_v45  ;;  %v1281_v3 = vld [vmem:[#allocation5 + $0x1a4] sm:$0xf0]  ;;  %v1280_v5 = vor.u32 %v1459_v63, %v1279_v61  ;;  %v1124_v6 = vor.u32 %v1417_v0, %v1121_v1  ;;  %v1414_v8 = vld [vmem:[#allocation5 + $0x38] sm:$0xf0]  ;;  %v1412_v12 = vld [vmem:[#allocation5 + $0x2c] sm:$0xf] }
  0x1f   :  { %631 = vmatpush.bf16.msra.mxu2 %v1164_v46  ;;  %v1099_v7 = vld [vmem:[#allocation5 + $0x28] sm:$0xf]  ;;  %v1284_v10 = vor.u32 %v1457_v2, %v1281_v3  ;;  %v1454_v11 = vld [vmem:[#allocation5 + $0x178] sm:$0xf0]  ;;  %v1101_v13 = vld [vmem:[#allocation5 + $0x3c] sm:$0xf0] }
  0x20   :  { %645 = vmatpush.bf16.msra.mxu3 %v1324_v50  ;;  %v1259_v9 = vld [vmem:[#allocation5 + $0x168] sm:$0xf]  ;;  %v1452_v14 = vld [vmem:[#allocation5 + $0x16c] sm:$0xf]  ;;  %v1261_v15 = vld [vmem:[#allocation5 + $0x17c] sm:$0xf0]  ;;  %v1100_v16 = vor.u32 %v1414_v8, %v1099_v7  ;;  %v1104_v21 = vor.u32 %v1412_v12, %v1101_v13 }
  0x21   :  { %604 = vmatpush.bf16.msra.mxu0 %v1140_v56  ;;  %v1079_v17 = vld [vmem:[#allocation5] sm:$0xf]  ;;  %v1409_v18 = vld [vmem:[#allocation5 + $0x10] sm:$0xf0]  ;;  %v1260_v20 = vor.u32 %v1454_v11, %v1259_v9  ;;  %v1407_v23 = vld [vmem:[#allocation5 + $0x4] sm:$0xf]  ;;  %v1264_v25 = vor.u32 %v1452_v14, %v1261_v15 }
  0x22   :  { %618 = vmatpush.bf16.msra.mxu1 %v1300_v57  ;;  %v1239_v19 = vld [vmem:[#allocation5 + $0x140] sm:$0xf]  ;;  %v1449_v22 = vld [vmem:[#allocation5 + $0x150] sm:$0xf0]  ;;  %v1081_v24 = vld [vmem:[#allocation5 + $0x14] sm:$0xf0]  ;;  %v1080_v32 = vor.u32 %v1409_v18, %v1079_v17 }
  0x23   :  { %632 = vmatpush.bf16.msra.mxu2 %v1144_v58  ;;  %v1447_v26 = vld [vmem:[#allocation5 + $0x144] sm:$0xf]  ;;  %v1241_v27 = vld [vmem:[#allocation5 + $0x154] sm:$0xf0]  ;;  %v1227_v28 = vld [vmem:[#allocation5 + $0x120] sm:$0xf]  ;;  %v1240_v36 = vor.u32 %v1449_v22, %v1239_v19  ;;  %v1084_v37 = vor.u32 %v1407_v23, %v1081_v24 }
  0x24   :  { %646 = vmatpush.bf16.msra.mxu3 %v1304_v62  ;;  %v1445_v29 = vld [vmem:[#allocation5 + $0x130] sm:$0xf0]  ;;  %v1387_v30 = vld [vmem:[#allocation5 + $0x260] sm:$0xf]  ;;  %v1443_v33 = vld [vmem:[#allocation5 + $0x124] sm:$0xf]  ;;  %v1244_v41 = vor.u32 %v1447_v26, %v1241_v27 }
  0x25   :  { %605 = vmatpush.bf16.msra.mxu0 %v1120_v4  ;;  %v1485_v31 = vld [vmem:[#allocation5 + $0x270] sm:$0xf0]  ;;  %v1229_v34 = vld [vmem:[#allocation5 + $0x134] sm:$0xf0]  ;;  %v1483_v35 = vld [vmem:[#allocation5 + $0x264] sm:$0xf]  ;;  %v1228_v42 = vor.u32 %v1445_v29, %v1227_v28 }
  0x26   :  { %619 = vmatpush.bf16.msra.mxu1 %v1280_v5  ;;  %v1389_v38 = vld [vmem:[#allocation5 + $0x274] sm:$0xf0]  ;;  %v1071_v39 = vld [vmem:[#allocation3] sm:$0xf]  ;;  %v1440_v44 = vld [vmem:[#allocation5 + $0x108] sm:$0xf0]  ;;  %v1388_v45 = vor.u32 %v1485_v31, %v1387_v30  ;;  %v1232_v46 = vor.u32 %v1443_v33, %v1229_v34 }
  0x27   :  { %633 = vmatpush.bf16.msra.mxu2 %v1124_v6  ;;  %v1406_v40 = vld [vmem:[#allocation3 + $0x4] sm:$0xf0]  ;;  %v1405_v48 = vld [vmem:[#allocation3 + $0x4] sm:$0xf]  ;;  %v1073_v49 = vld [vmem:[#allocation3 + $0x8] sm:$0xf0]  ;;  %v1392_v50 = vor.u32 %v1483_v35, %v1389_v38 }
  0x28   :  { %647 = vmatpush.bf16.msra.mxu3 %v1284_v10  ;;  %v1207_v43 = vld [vmem:[#allocation5 + $0xf8] sm:$0xf]  ;;  %v1480_v51 = vld [vmem:[#allocation5 + $0x248] sm:$0xf0]  ;;  %v1438_v52 = vld [vmem:[#allocation5 + $0xfc] sm:$0xf]  ;;  %v1651_v54 = vor.u32 %v1406_v40, %v1071_v39  ;;  %v1653_v57 = vor.u32 %v1405_v48, %v1073_v49 }
  0x29   :  { %606 = vmatpush.bf16.msra.mxu0 %v1100_v16  ;;  %v1367_v47 = vld [vmem:[#allocation5 + $0x238] sm:$0xf]  ;;  %v1209_v53 = vld [vmem:[#allocation5 + $0x10c] sm:$0xf0]  ;;  %v1478_v55 = vld [vmem:[#allocation5 + $0x23c] sm:$0xf]  ;;  %v1208_v58 = vor.u32 %v1440_v44, %v1207_v43 }
  0x2a   :  { %620 = vmatpush.bf16.msra.mxu1 %v1260_v20  ;;  %v1369_v56 = vld [vmem:[#allocation5 + $0x24c] sm:$0xf0]  ;;  %v1368_v59 = vor.u32 %v1480_v51, %v1367_v47  ;;  %v1212_v60 = vor.u32 %v1438_v52, %v1209_v53  ;;  %v1435_v62 = vld [vmem:[#allocation5 + $0xe0] sm:$0xf0]  ;;  %v1433_v2 = vld [vmem:[#allocation5 + $0xd4] sm:$0xf] }
  0x2b   :  { %634 = vmatpush.bf16.msra.mxu2 %v1104_v21  ;;  %v1187_v61 = vld [vmem:[#allocation5 + $0xd0] sm:$0xf]  ;;  %v1372_v0 = vor.u32 %v1478_v55, %v1369_v56  ;;  %v1475_v1 = vld [vmem:[#allocation5 + $0x220] sm:$0xf0]  ;;  %v1189_v3 = vld [vmem:[#allocation5 + $0xe4] sm:$0xf0] }
  0x2c   :  { %648 = vmatpush.bf16.msra.mxu3 %v1264_v25  ;;  %v1347_v63 = vld [vmem:[#allocation5 + $0x210] sm:$0xf]  ;;  %v1473_v4 = vld [vmem:[#allocation5 + $0x214] sm:$0xf]  ;;  %v1349_v5 = vld [vmem:[#allocation5 + $0x224] sm:$0xf0]  ;;  %v1188_v6 = vor.u32 %v1435_v62, %v1187_v61  ;;  %v1192_v8 = vor.u32 %v1433_v2, %v1189_v3 }
  0x2d   :  { %607 = vmatpush.bf16.msra.mxu0 %v1080_v32  ;;  %v1348_v7 = vor.u32 %v1475_v1, %v1347_v63  ;;  %v1167_v9 = vld [vmem:[#allocation5 + $0xa8] sm:$0xf]  ;;  %v1430_v10 = vld [vmem:[#allocation5 + $0xb8] sm:$0xf0]  ;;  %v1352_v12 = vor.u32 %v1473_v4, %v1349_v5  ;;  %v1428_v14 = vld [vmem:[#allocation5 + $0xac] sm:$0xf] }
  0x2e   :  { %621 = vmatpush.bf16.msra.mxu1 %v1240_v36  ;;  %v1327_v11 = vld [vmem:[#allocation5 + $0x1e8] sm:$0xf]  ;;  %v1470_v13 = vld [vmem:[#allocation5 + $0x1f8] sm:$0xf0]  ;;  %v1169_v15 = vld [vmem:[#allocation5 + $0xbc] sm:$0xf0]  ;;  %v1168_v18 = vor.u32 %v1430_v10, %v1167_v9 }
  0x2f   :  { %635 = vmatpush.bf16.msra.mxu2 %v1084_v37  ;;  %v1468_v16 = vld [vmem:[#allocation5 + $0x1ec] sm:$0xf]  ;;  %v1329_v17 = vld [vmem:[#allocation5 + $0x1fc] sm:$0xf0]  ;;  %v1328_v19 = vor.u32 %v1470_v13, %v1327_v11  ;;  %v1172_v20 = vor.u32 %v1428_v14, %v1169_v15  ;;  %v1425_v22 = vld [vmem:[#allocation5 + $0x90] sm:$0xf0] }
  0x30   :  { %649 = vmatpush.bf16.msra.mxu3 %v1244_v41  ;;  %608 = vmatmul.bf16.vlgmr.msra.gmra.mxu0 %v1651_v54  ;;  %v1147_v21 = vld [vmem:[#allocation5 + $0x80] sm:$0xf]  ;;  %v1332_v24 = vor.u32 %v1468_v16, %v1329_v17  ;;  %v1465_v25 = vld [vmem:[#allocation5 + $0x1d0] sm:$0xf0]  ;;  %v1423_v26 = vld [vmem:[#allocation5 + $0x84] sm:$0xf] }
  0x31   :  { %656 = vmatpush.bf16.msrb.mxu0 %v1228_v42  ;;  %622 = vmatmul.bf16.vlgmr.msra.gmra.mxu1 %v1653_v57  ;;  %v1307_v23 = vld [vmem:[#allocation5 + $0x1c0] sm:$0xf]  ;;  %v1149_v27 = vld [vmem:[#allocation5 + $0x94] sm:$0xf0]  ;;  %v1463_v28 = vld [vmem:[#allocation5 + $0x1c4] sm:$0xf]  ;;  %v1148_v30 = vor.u32 %v1425_v22, %v1147_v21 }
  0x32   :  { %670 = vmatpush.bf16.msrb.mxu1 %v1388_v45  ;;  %636 = vmatmul.bf16.vlgmr.msra.gmra.mxu2 %v1651_v54  ;;  %v1309_v29 = vld [vmem:[#allocation5 + $0x1d4] sm:$0xf0]  ;;  %v1308_v31 = vor.u32 %v1465_v25, %v1307_v23  ;;  %v1152_v32 = vor.u32 %v1423_v26, %v1149_v27  ;;  %v1420_v34 = vld [vmem:[#allocation5 + $0x68] sm:$0xf0]  ;;  %v1418_v38 = vld [vmem:[#allocation5 + $0x5c] sm:$0xf] }
  0x33   :  { %684 = vmatpush.bf16.msrb.mxu2 %v1232_v46  ;;  %650 = vmatmul.bf16.vlgmr.msra.gmra.mxu3 %v1653_v57  ;;  %v1127_v33 = vld [vmem:[#allocation5 + $0x58] sm:$0xf]  ;;  %v1312_v36 = vor.u32 %v1463_v28, %v1309_v29  ;;  %v1460_v37 = vld [vmem:[#allocation5 + $0x1a8] sm:$0xf0]  ;;  %v1129_v39 = vld [vmem:[#allocation5 + $0x6c] sm:$0xf0] }
  0x34   :  { %698 = vmatpush.bf16.msrb.mxu3 %v1392_v50  ;;  %v1287_v35 = vld [vmem:[#allocation5 + $0x198] sm:$0xf]  ;;  %v1458_v40 = vld [vmem:[#allocation5 + $0x19c] sm:$0xf]  ;;  %v1289_v41 = vld [vmem:[#allocation5 + $0x1ac] sm:$0xf0]  ;;  %v1128_v42 = vor.u32 %v1420_v34, %v1127_v33  ;;  %v1132_v44 = vor.u32 %v1418_v38, %v1129_v39 }
  0x35   :  { %657 = vmatpush.bf16.msrb.mxu0 %v1208_v58  ;;  %v1288_v43 = vor.u32 %v1460_v37, %v1287_v35  ;;  %v1107_v45 = vld [vmem:[#allocation5 + $0x30] sm:$0xf]  ;;  %v1415_v46 = vld [vmem:[#allocation5 + $0x40] sm:$0xf0]  ;;  %v1292_v48 = vor.u32 %v1458_v40, %v1289_v41  ;;  %v1413_v50 = vld [vmem:[#allocation5 + $0x34] sm:$0xf] }
  0x36   :  { %671 = vmatpush.bf16.msrb.mxu1 %v1368_v59  ;;  %v1267_v47 = vld [vmem:[#allocation5 + $0x170] sm:$0xf]  ;;  %v1455_v49 = vld [vmem:[#allocation5 + $0x180] sm:$0xf0]  ;;  %v1109_v51 = vld [vmem:[#allocation5 + $0x44] sm:$0xf0]  ;;  %v1108_v55 = vor.u32 %v1415_v46, %v1107_v45 }
  0x37   :  { %685 = vmatpush.bf16.msrb.mxu2 %v1212_v60  ;;  %v1453_v52 = vld [vmem:[#allocation5 + $0x174] sm:$0xf]  ;;  %v1269_v53 = vld [vmem:[#allocation5 + $0x184] sm:$0xf0]  ;;  %v1268_v56 = vor.u32 %v1455_v49, %v1267_v47  ;;  %v1112_v58 = vor.u32 %v1413_v50, %v1109_v51  ;;  %v1410_v60 = vld [vmem:[#allocation5 + $0x18] sm:$0xf0] }
  0x38   :  { %699 = vmatpush.bf16.msrb.mxu3 %v1372_v0  ;;  %v1087_v59 = vld [vmem:[#allocation5 + $0x8] sm:$0xf]  ;;  %v1272_v62 = vor.u32 %v1453_v52, %v1269_v53  ;;  %v1450_v63 = vld [vmem:[#allocation5 + $0x158] sm:$0xf0]  ;;  %v1408_v0 = vld [vmem:[#allocation5 + $0xc] sm:$0xf] }
  0x39   :  { %658 = vmatpush.bf16.msrb.mxu0 %v1188_v6  ;;  %v1247_v61 = vld [vmem:[#allocation5 + $0x148] sm:$0xf]  ;;  %v1089_v1 = vld [vmem:[#allocation5 + $0x1c] sm:$0xf0]  ;;  %v1448_v2 = vld [vmem:[#allocation5 + $0x14c] sm:$0xf]  ;;  %v1088_v4 = vor.u32 %v1410_v60, %v1087_v59 }
  0x3a   :  { %672 = vmatpush.bf16.msrb.mxu1 %v1348_v7  ;;  %v1249_v3 = vld [vmem:[#allocation5 + $0x15c] sm:$0xf0]  ;;  %v1248_v5 = vor.u32 %v1450_v63, %v1247_v61  ;;  %v1092_v6 = vor.u32 %v1408_v0, %v1089_v1  ;;  %v1446_v9 = vld [vmem:[#allocation5 + $0x138] sm:$0xf0]  ;;  %v1195_v14 = vld [vmem:[#allocation5 + $0xd8] sm:$0xf] }
  0x3b   :  { %686 = vmatpush.bf16.msrb.mxu2 %v1192_v8  ;;  %v1252_v7 = vor.u32 %v1448_v2, %v1249_v3  ;;  %v1235_v8 = vld [vmem:[#allocation5 + $0x128] sm:$0xf]  ;;  %v1215_v11 = vld [vmem:[#allocation5 + $0x100] sm:$0xf]  ;;  %v1436_v15 = vld [vmem:[#allocation5 + $0xe8] sm:$0xf0] }
  0x3c   :  { %700 = vmatpush.bf16.msrb.mxu3 %v1352_v12  ;;  %v1236_v10 = vor.u32 %v1446_v9, %v1235_v8  ;;  %v1441_v12 = vld [vmem:[#allocation5 + $0x110] sm:$0xf0]  ;;  %v1175_v16 = vld [vmem:[#allocation5 + $0xb0] sm:$0xf]  ;;  %v1196_v17 = vor.u32 %v1436_v15, %v1195_v14  ;;  %v1426_v21 = vld [vmem:[#allocation5 + $0x98] sm:$0xf0] }
  0x3d   :  { %659 = vmatpush.bf16.msrb.mxu0 %v1168_v18  ;;  %v1216_v13 = vor.u32 %v1441_v12, %v1215_v11  ;;  %v1431_v18 = vld [vmem:[#allocation5 + $0xc0] sm:$0xf0]  ;;  %v1135_v23 = vld [vmem:[#allocation5 + $0x60] sm:$0xf]  ;;  %v1115_v26 = vld [vmem:[#allocation5 + $0x38] sm:$0xf] }
  0x3e   :  { %673 = vmatpush.bf16.msrb.mxu1 %v1328_v19  ;;  %v1176_v19 = vor.u32 %v1431_v18, %v1175_v16  ;;  %v1416_v27 = vld [vmem:[#allocation5 + $0x48] sm:$0xf0]  ;;  %v1095_v29 = vld [vmem:[#allocation5 + $0x10] sm:$0xf]  ;;  %v1395_v41 = vld [vmem:[#allocation5 + $0x268] sm:$0xf] }
  0x3f   :  { %687 = vmatpush.bf16.msrb.mxu2 %v1172_v20  ;;  %v1155_v20 = vld [vmem:[#allocation5 + $0x88] sm:$0xf]  ;;  %v1116_v28 = vor.u32 %v1416_v27, %v1115_v26  ;;  %v1481_v45 = vld [vmem:[#allocation5 + $0x250] sm:$0xf0]  ;;  %v1664_v46 = vld [vmem:[#allocation7] sm:$0x1f] }
  0x40   :  { %701 = vmatpush.bf16.msrb.mxu3 %v1332_v24  ;;  %v1156_v22 = vor.u32 %v1426_v21, %v1155_v20  ;;  %v1421_v24 = vld [vmem:[#allocation5 + $0x70] sm:$0xf0]  ;;  %v166_v47 = vperm.slane %v1664_v46, 2  ;;  %v1355_v51 = vld [vmem:[#allocation5 + $0x218] sm:$0xf]  ;;  %v164_v59 = vperm.slane %v1664_v46, 0 }
  0x41   :  { %660 = vmatpush.bf16.msrb.mxu0 %v1148_v30  ;;  %v1136_v25 = vor.u32 %v1421_v24, %v1135_v23  ;;  %v1411_v30 = vld [vmem:[#allocation5 + $0x20] sm:$0xf0]  ;;  %v1476_v52 = vld [vmem:[#allocation5 + $0x228] sm:$0xf0]  ;;  %v165_v60 = vperm.slane %v1664_v46, 1  ;;  %vm758_vm0 = vcmask 523264  }
  0x42   :  { %674 = vmatpush.bf16.msrb.mxu1 %v1308_v31  ;;  %v1096_v31 = vor.u32 %v1411_v30, %v1095_v29  ;;  %v1471_v63 = vld [vmem:[#allocation5 + $0x200] sm:$0xf0]  ;;  %v1466_v8 = vld [vmem:[#allocation5 + $0x1d8] sm:$0xf0]  ;;  %v1295_v23 = vld [vmem:[#allocation5 + $0x1a0] sm:$0xf] }
  0x43   :  { %688 = vmatpush.bf16.msrb.mxu2 %v1152_v32  ;;  %v1461_v24 = vld [vmem:[#allocation5 + $0x1b0] sm:$0xf0]  ;;  %s1613_s0 = smov 64   ;;  %vm783_vm2 = vcmask 130048   ;;  %s1614_s2 = smov 127   ;;  %vm1060_vm3 = vcmask 7168  }
  0x44   :  { %702 = vmatpush.bf16.msrb.mxu3 %v1312_v36  ;;  %s1615_s7 = smov 125   ;;  %s1616_s8 = smov 126  }
  0x45   :  { %661 = vmatpush.bf16.msrb.mxu0 %v1128_v42  ;;  %v1486_v42 = vld [vmem:[#allocation5 + $0x278] sm:$0xf0] }
  0x46   :  { %675 = vmatpush.bf16.msrb.mxu1 %v1288_v43  ;;  %v1375_v43 = vld [vmem:[#allocation5 + $0x240] sm:$0xf] }
  0x47   :  { %689 = vmatpush.bf16.msrb.mxu2 %v1132_v44  ;;  %v1396_v44 = vor.u32 %v1486_v42, %v1395_v41  ;;  %v1275_v42 = vld [vmem:[#allocation5 + $0x178] sm:$0xf] }
  0x48   :  { %703 = vmatpush.bf16.msrb.mxu3 %v1292_v48  ;;  %v167_v48 = vperm.slane %v1664_v46, 3 }
  0x49   :  { %662 = vmatpush.bf16.msrb.mxu0 %v1108_v55 }
  0x4a   :  { %676 = vmatpush.bf16.msrb.mxu1 %v1268_v56 }
  0x4b   :  { %690 = vmatpush.bf16.msrb.mxu2 %v1112_v58  ;;  %v1356_v58 = vor.u32 %v1476_v52, %v1355_v51 }
  0x4c   :  { %704 = vmatpush.bf16.msrb.mxu3 %v1272_v62  ;;  %v1335_v62 = vld [vmem:[#allocation5 + $0x1f0] sm:$0xf] }
  0x4d   :  { %663 = vmatpush.bf16.msrb.mxu0 %v1088_v4  ;;  %v1336_v3 = vor.u32 %v1471_v63, %v1335_v62 }
  0x4e   :  { %677 = vmatpush.bf16.msrb.mxu1 %v1248_v5 }
  0x4f   :  { %691 = vmatpush.bf16.msrb.mxu2 %v1092_v6 }
  0x50   :  { %705 = vmatpush.bf16.msrb.mxu3 %v1252_v7  ;;  %664 = vmatmul.bf16.vlgmr.msrb.gmra.mxu0 %v1651_v54  ;;  %v1315_v7 = vld [vmem:[#allocation5 + $0x1c8] sm:$0xf] }
  0x51   :  { %678 = vmatmul.bf16.vlgmr.msrb.gmra.mxu1 %v1653_v57  ;;  %712 = vmatpush.bf16.msra.mxu0 %v1236_v10 }
  0x52   :  { %692 = vmatmul.bf16.vlgmr.msrb.gmra.mxu2 %v1651_v54  ;;  %726 = vmatpush.bf16.msra.mxu1 %v1396_v44 }
  0x53   :  { %706 = vmatmul.bf16.vlgmr.msrb.gmra.mxu3 %v1653_v57 }
  0x55   :  { %713 = vmatpush.bf16.msra.mxu0 %v1216_v13 }
  0x59   :  { %714 = vmatpush.bf16.msra.mxu0 %v1196_v17  ;;  %v1316_v17 = vor.u32 %v1466_v8, %v1315_v7 }
  0x5d   :  { %715 = vmatpush.bf16.msra.mxu0 %v1176_v19 }
  0x61   :  { %716 = vmatpush.bf16.msra.mxu0 %v1156_v22 }
  0x65   :  { %717 = vmatpush.bf16.msra.mxu0 %v1136_v25 }
  0x69   :  { %718 = vmatpush.bf16.msra.mxu0 %v1116_v28 }
  0x6d   :  { %719 = vmatpush.bf16.msra.mxu0 %v1096_v31 }
  0x70   :  { %720 = vmatmul.bf16.vlgmr.msra.gmra.mxu0 %v1651_v54  ;;  %v1376_v54 = vor.u32 %v1481_v45, %v1375_v43  ;;  %v1456_v43 = vld [vmem:[#allocation5 + $0x188] sm:$0xf0]  ;;  %v1255_v45 = vld [vmem:[#allocation5 + $0x150] sm:$0xf] }
  0x71   :  { %v1276_v44 = vor.u32 %v1456_v43, %v1275_v42 }
  0x72   :  { %727 = vmatpush.bf16.msra.mxu1 %v1376_v54 }
  0x76   :  { %728 = vmatpush.bf16.msra.mxu1 %v1356_v58 }
  0x7a   :  { %729 = vmatpush.bf16.msra.mxu1 %v1336_v3 }
  0x7e   :  { %730 = vmatpush.bf16.msra.mxu1 %v1316_v17 }
  0xad   :  { %v609_v32 = vpop.f32.mrf.mxu0 }
  0xae   :  { %v623_v33 = vpop.f32.mrf.mxu1  ;;  %v610_v4 = vadd.f32 %v609_v32, %v164_v59 }
  0xb0   :  { %v624_v18 = vadd.f32 %v623_v33, %v610_v4  ;;  %v168_v4 = vperm.slane %v1664_v46, 4 }
  0xb5   :  { %v637_v34 = vpop.f32.mrf.mxu2  ;;  %v611_v36 = vpop.f32.mrf.mxu0 }
  0xb6   :  { %v651_v35 = vpop.f32.mrf.mxu3  ;;  %v625_v37 = vpop.f32.mrf.mxu1  ;;  %v638_v5 = vadd.f32 %v637_v34, %v165_v60  ;;  %v612_v9 = vadd.f32 %v611_v36, %v164_v59  ;;  %v1296_v34 = vor.u32 %v1461_v24, %v1295_v23 }
  0xb8   :  { %v652_v19 = vadd.f32 %v651_v35, %v638_v5  ;;  %v626_v20 = vadd.f32 %v625_v37, %v612_v9  ;;  %731 = vmatpush.bf16.msra.mxu1 %v1296_v34 }
  0xba   :  { %v740_v29 = vpack.c.bf16 %v652_v19, %v624_v18 }
  0xbc   :  { %v902_v36 = vunpack.c.h.b16 %v740_v29  ;;  %732 = vmatpush.bf16.msra.mxu1 %v1276_v44 }
  0xbd   :  { %v639_v38 = vpop.f32.mrf.mxu2 }
  0xbe   :  { %v653_v39 = vpop.f32.mrf.mxu3  ;;  %v640_v10 = vadd.f32 %v639_v38, %v165_v60  ;;  %v750_v38 = vunpack.c.l.b16 %v740_v29 }
  0xc0   :  { %v654_v21 = vadd.f32 %v653_v39, %v640_v10 }
  0xc2   :  { %v741_v30 = vpack.c.bf16 %v654_v21, %v626_v20 }
  0xc4   :  { %v903_v37 = vunpack.c.h.b16 %v741_v30  ;;  %v751_v39 = vunpack.c.l.b16 %v741_v30 }
  0xc6   :  { %v752_v41 = vpack.c.b16 %v751_v39, %v750_v38 }
  0xcd   :  { %v665_v40 = vpop.f32.mrf.mxu0 }
  0xce   :  { %v679_v49 = vpop.f32.mrf.mxu1  ;;  %v666_v55 = vadd.f32 %v665_v40, %v166_v47  ;;  %v904_v40 = vpack.c.b16 %v903_v37, %v902_v36 }
  0xd0   :  { %v680_v0 = vadd.f32 %v679_v49, %v666_v55  ;;  %v745_v55 = vlaneseq }
  0xd5   :  { %v693_v50 = vpop.f32.mrf.mxu2  ;;  %v667_v61 = vpop.f32.mrf.mxu0 }
  0xd6   :  { %v707_v53 = vpop.f32.mrf.mxu3  ;;  %v694_v56 = vadd.f32 %v693_v50, %v167_v48  ;;  %v668_v2 = vadd.f32 %v667_v61, %v166_v47  ;;  %v681_v12 = vpop.f32.mrf.mxu1  ;;  %v1451_v47 = vld [vmem:[#allocation5 + $0x160] sm:$0xf0] }
  0xd8   :  { %v708_v1 = vadd.f32 %v707_v53, %v694_v56  ;;  %v682_v15 = vadd.f32 %v681_v12, %v668_v2  ;;  %v1678_v56 = vand.u32 127, %v745_v55 }
  0xda   :  { %v742_v14 = vpack.c.bf16 %v708_v1, %v680_v0  ;;  %vm747_vm1 = vcmp.lt.s32.totalorder %v1678_v56, 8 }
  0xdc   :  { %v905_v25 = vunpack.c.h.b16 %v742_v14  ;;  %v755_v27 = vunpack.c.l.b16 %v742_v14 }
  0xdd   :  { %v695_v6 = vpop.f32.mrf.mxu2 }
  0xde   :  { %v696_v11 = vadd.f32 %v695_v6, %v167_v48  ;;  %v709_v13 = vpop.f32.mrf.mxu3  ;;  %v1256_v48 = vor.u32 %v1451_v47, %v1255_v45 }
  0xe0   :  { %v710_v16 = vadd.f32 %v709_v13, %v696_v11  ;;  %733 = vmatpush.bf16.msra.mxu1 %v1256_v48 }
  0xe2   :  { %v743_v22 = vpack.c.bf16 %v710_v16, %v682_v15 }
  0xe3   :  { %734 = vmatmul.bf16.vlgmr.msra.gmra.mxu1 %v1653_v57 }
  0xe4   :  { %v906_v26 = vunpack.c.h.b16 %v743_v22  ;;  %v756_v28 = vunpack.c.l.b16 %v743_v22 }
  0xe6   :  { %v907_v31 = vpack.c.b16 %v906_v26, %v905_v25  ;;  %v757_v32 = vpack.c.b16 %v756_v28, %v755_v27 }
  0xe8   :  { %982 = vrot.lane.b32.xlu1 %v907_v31, %s1613_s0  ;;  %828 = vrot.lane.b32.xlu0 %v757_v32, %s1613_s0  ;;  %v763_v33 = vsel %vm758_vm0, %v757_v32, 0  ;;  %v912_v35 = vsel %vm758_vm0, %v907_v31, 0 }
  0xe9   :  { %772 = vmatpush.bf16.xpose.msra.mxu2 %v763_v33  ;;  %921 = vmatpush.bf16.xpose.msrb.mxu0 %v912_v35 }
  0xed   :  { %v721_v53 = vpop.f32.mrf.mxu0 }
  0xee   :  { %v722_v6 = vadd.f32 %v721_v53, %v168_v4 }
  0xf0   :  { %980 = vrot.lane.b32.xlu1 %v904_v40, %s1613_s0  ;;  %1401 = vmatmul.msk.bf16.vlgmr.msrb.gmra.mxu0 %vm758_vm0, %v904_v40 }
  0xf1   :  { %826 = vrot.lane.b32.xlu0 %v752_v41, %s1613_s0  ;;  %1397 = vmatmul.msk.bf16.vlgmr.msra.gmra.mxu2 %vm758_vm0, %v752_v41 }
  0xf5   :  { %v723_v60 = vpop.f32.mrf.mxu0 }
  0xf6   :  { %v724_v7 = vadd.f32 %v723_v60, %v168_v4 }
 0x15a   :  { %v983_v54 = vpop.permute.xlu1 %982  ;;  %v829_v49 = vpop.permute.xlu0 %828 }
 0x15b   :  { %v988_v50 = vsel %vm758_vm0, %v983_v54, 0  ;;  %v834_v51 = vsel %vm758_vm0, %v829_v49, 0 }
 0x15c   :  { %843 = vmatpush.bf16.xpose.msrb.mxu2 %v834_v51 }
 0x160   :  { %v735_v5 = vpop.f32.mrf.mxu1 }
 0x161   :  { %v736_v8 = vadd.f32 %v735_v5, %v722_v6 }
 0x162   :  { %v981_v58 = vpop.permute.xlu1 %980 }
 0x163   :  { %v827_v52 = vpop.permute.xlu0 %826 }
 0x164   :  { %997 = vmatpush.bf16.xpose.msra.mxu2 %v988_v50 }
 0x165   :  { %1399 = vmatmul.msk.bf16.vlgmr.msrb.gmra.mxu2 %vm758_vm0, %v827_v52 }
 0x168   :  { %v737_v9 = vpop.f32.mrf.mxu1 }
 0x169   :  { %v738_v10 = vadd.f32 %v737_v9, %v724_v7 }
 0x16b   :  { %v744_v11 = vpack.c.bf16 %v738_v10, %v736_v8 }
 0x16d   :  { %v923_v1 = vpop.f32.mrf.mxu0  ;;  %813 = vmatpush.bf16.msra.mxu3 %v744_v11  ;;  %959 = vmatpush.bf16.msrb.mxu1 %v744_v11 }
 0x16e   :  { %v928_v2 = vsel %vm747_vm1, %v923_v1, -1e+30 }
 0x16f   :  { %v930_v3 = vsel %vm783_vm2, %v928_v2, -inf }
 0x171   :  { %881 = vmatpush.bf16.msrb.mxu3 %v744_v11 }
 0x174   :  { %v774_v59 = vpop.f32.mrf.mxu2 }
 0x175   :  { %1403 = vmatmul.msk.bf16.vlgmr.msra.gmra.mxu2 %vm758_vm0, %v981_v58  ;;  %v781_v57 = vsel %vm747_vm1, %v774_v59, -1e+30  ;;  %v925_v35 = vpop.f32.mrf.mxu0 }
 0x176   :  { %v784_v61 = vsel %vm783_vm2, %v781_v57, -inf  ;;  %v929_v37 = vsel %vm747_vm1, %v925_v35, -1e+30 }
 0x177   :  { %785 = vmax.xlane.f32.xlu2 %v784_v61  ;;  %v933_v39 = vsel %vm783_vm2, %v929_v37, -inf }
 0x17c   :  { %v776_v62 = vpop.f32.mrf.mxu2 }
 0x17d   :  { %v782_v63 = vsel %vm747_vm1, %v776_v62, -1e+30 }
 0x17e   :  { %v787_v0 = vsel %vm783_vm2, %v782_v63, -inf }
 0x17f   :  { %788 = vmax.xlane.f32.xlu2 %v787_v0 }
 0x187   :  { %931 = vmax.xlane.f32.xlu2 %v930_v3 }
 0x1e8   :  { %v845_v12 = vpop.f32.mrf.mxu2 }
 0x1e9   :  { %v850_v13 = vsel %vm747_vm1, %v845_v12, -1e+30 }
 0x1ea   :  { %v852_v14 = vsel %vm783_vm2, %v850_v13, -inf  ;;  %v786_v15 = vpop.xlane.xlu2 %785 }
 0x1eb   :  { %853 = vmax.xlane.f32.xlu0 %v852_v14  ;;  %v790_v16 = vsub.f32 %v781_v57, %v786_v15 }
 0x1ed   :  { %v792_v19 = vmul.f32 1.442695, %v790_v16 }
 0x1ef   :  { %1498 = vpow2.f32 %v792_v19 }
 0x1f0   :  { %v847_v46 = vpop.f32.mrf.mxu2 }
 0x1f1   :  { %v851_v17 = vsel %vm747_vm1, %v847_v46, -1e+30 }
 0x1f2   :  { %v855_v18 = vsel %vm783_vm2, %v851_v17, -inf  ;;  %v789_v20 = vpop.xlane.xlu2 %788 }
 0x1f3   :  { %856 = vmax.xlane.f32.xlu1 %v855_v18  ;;  %v791_v21 = vsub.f32 %v782_v63, %v789_v20 }
 0x1f5   :  { %v794_v22 = vmul.f32 1.442695, %v791_v21  ;;  %v1499_v28 = vpop.eup %1498 }
 0x1f6   :  { %v796_v6 = vsel %vm783_vm2, %v1499_v28, 0.0 }
 0x1f7   :  { %1500 = vpow2.f32 %v794_v22 }
 0x1f8   :  { %v999_v23 = vpop.f32.mrf.mxu2 }
 0x1f9   :  { %v1004_v24 = vsel %vm747_vm1, %v999_v23, -1e+30 }
 0x1fa   :  { %v1006_v25 = vsel %vm783_vm2, %v1004_v24, -inf  ;;  %v932_v26 = vpop.xlane.xlu2 %931 }
 0x1fb   :  { %1007 = vmax.xlane.f32.xlu2 %v1006_v25  ;;  %v936_v27 = vsub.f32 %v928_v2, %v932_v26 }
 0x1fd   :  { %v1501_v29 = vpop.eup %1500  ;;  %v938_v30 = vmul.f32 1.442695, %v936_v27 }
 0x1fe   :  { %v802_v31 = vpack.c.bf16 %v1501_v29, %v1499_v28  ;;  %v799_v1 = vsel %vm783_vm2, %v1501_v29, 0.0 }
 0x1ff   :  { %1502 = vpow2.f32 %v938_v30 }
 0x200   :  { %v1001_v32 = vpop.f32.mrf.mxu2  ;;  %1398 = vmatmul.msk.bf16.vlgmr.msra.gmra.mxu3 %vm783_vm2, %v802_v31 }
 0x201   :  { %v1005_v34 = vsel %vm747_vm1, %v1001_v32, -1e+30  ;;  %1035 = vmatpush.bf16.msra.mxu3 %v744_v11 }
 0x202   :  { %v1009_v33 = vsel %vm783_vm2, %v1005_v34, -inf }
 0x203   :  { %1010 = vmax.xlane.f32.xlu2 %v1009_v33 }
 0x205   :  { %v1503_v36 = vpop.eup %1502 }
 0x206   :  { %v942_v38 = vsel %vm783_vm2, %v1503_v36, 0.0 }
 0x207   :  { %943 = vadd.xlane.f32.xlu0 %v942_v38 }
 0x20b   :  { %934 = vmax.xlane.f32.xlu2 %v933_v39 }
 0x25e   :  { %v854_v40 = vpop.xlane.xlu0 %853 }
 0x25f   :  { %v858_v41 = vsub.f32 %v850_v13, %v854_v40 }
 0x261   :  { %v860_v42 = vmul.f32 1.442695, %v858_v41 }
 0x263   :  { %1504 = vpow2.f32 %v860_v42 }
 0x266   :  { %v857_v43 = vpop.xlane.xlu1 %856 }
 0x267   :  { %v859_v44 = vsub.f32 %v851_v17, %v857_v43 }
 0x269   :  { %v1505_v45 = vpop.eup %1504  ;;  %v862_v47 = vmul.f32 1.442695, %v859_v44 }
 0x26a   :  { %v864_v48 = vsel %vm783_vm2, %v1505_v45, 0.0 }
 0x26b   :  { %1506 = vpow2.f32 %v862_v47  ;;  %865 = vadd.xlane.f32.xlu2 %v864_v48 }
 0x26e   :  { %v1008_v54 = vpop.xlane.xlu2 %1007 }
 0x26f   :  { %v1012_v49 = vsub.f32 %v1004_v24, %v1008_v54 }
 0x271   :  { %v1507_v50 = vpop.eup %1506  ;;  %v1014_v51 = vmul.f32 1.442695, %v1012_v49 }
 0x272   :  { %v870_v52 = vpack.c.bf16 %v1507_v50, %v1505_v45  ;;  %v867_v53 = vsel %vm783_vm2, %v1507_v50, 0.0  ;;  %v1057_v45 = vstv %s1731_s3 }
 0x273   :  { %1508 = vpow2.f32 %v1014_v51  ;;  %868 = vadd.xlane.f32.xlu2 %v867_v53 }
 0x274   :  { %1400 = vmatmul.msk.bf16.vlgmr.msrb.gmra.mxu3 %vm783_vm2, %v870_v52 }
 0x276   :  { %v1011_v55 = vpop.xlane.xlu2 %1010 }
 0x277   :  { %v1013_v56 = vsub.f32 %v1005_v34, %v1011_v55 }
 0x279   :  { %v1509_v58 = vpop.eup %1508  ;;  %v1016_v59 = vmul.f32 1.442695, %v1013_v56 }
 0x27a   :  { %v1018_v57 = vsel %vm783_vm2, %v1509_v58, 0.0  ;;  %v944_v15 = vpop.xlane.xlu0 %943 }
 0x27b   :  { %1510 = vpow2.f32 %v1016_v59  ;;  %1019 = vadd.xlane.f32.xlu2 %v1018_v57 }
 0x27e   :  { %v935_v60 = vpop.xlane.xlu2 %934 }
 0x27f   :  { %v937_v61 = vsub.f32 %v929_v37, %v935_v60 }
 0x281   :  { %v1511_v62 = vpop.eup %1510  ;;  %v940_v63 = vmul.f32 1.442695, %v937_v61 }
 0x282   :  { %v1024_v0 = vpack.c.bf16 %v1511_v62, %v1509_v58  ;;  %v1021_v2 = vsel %vm783_vm2, %v1511_v62, 0.0 }
 0x283   :  { %1512 = vpow2.f32 %v940_v63  ;;  %800 = vadd.xlane.f32.xlu2 %v799_v1  ;;  %1022 = vadd.xlane.f32.xlu0 %v1021_v2  ;;  %v815_v7 = vpop.f32.mrf.mxu3 }
 0x284   :  { %1404 = vmatmul.msk.bf16.vlgmr.msra.gmra.mxu3 %vm783_vm2, %v1024_v0 }
 0x289   :  { %v1513_v3 = vpop.eup %1512 }
 0x28a   :  { %v948_v4 = vpack.c.bf16 %v1513_v3, %v1503_v36  ;;  %v945_v5 = vsel %vm783_vm2, %v1513_v3, 0.0 }
 0x28b   :  { %946 = vadd.xlane.f32.xlu1 %v945_v5  ;;  %v817_v9 = vpop.f32.mrf.mxu3 }
 0x28c   :  { %1402 = vmatmul.msk.bf16.vlgmr.msrb.gmra.mxu1 %vm783_vm2, %v948_v4 }
 0x293   :  { %797 = vadd.xlane.f32.xlu1 %v796_v6 }
 0x2de   :  { %v866_v8 = vpop.xlane.xlu2 %865 }
 0x2e6   :  { %v869_v10 = vpop.xlane.xlu2 %868 }
 0x2e7   :  { %1514 = vrcp.f32 %v869_v10 }
 0x2ed   :  { %v1515_v13 = vpop.eup %1514 }
 0x2ee   :  { %v1020_v12 = vpop.xlane.xlu2 %1019 }
 0x2ef   :  { %1516 = vrcp.f32 %v1020_v12 }
 0x2f0   :  { %1518 = vrcp.f32 %v944_v15 }
 0x2f5   :  { %v1517_v46 = vpop.eup %1516 }
 0x2f6   :  { %v1519_v20 = vpop.eup %1518  ;;  %v1023_v26 = vpop.xlane.xlu0 %1022 }
 0x2f7   :  { %v883_v11 = vpop.f32.mrf.mxu3  ;;  %v801_v34 = vpop.xlane.xlu2 %800 }
 0x2fe   :  { %v947_v18 = vpop.xlane.xlu1 %946 }
 0x2ff   :  { %v885_v14 = vpop.f32.mrf.mxu3  ;;  %1520 = vrcp.f32 %v947_v18 }
 0x300   :  { %v891_v16 = vmul.f32 %v1515_v13, %v885_v14  ;;  %1522 = vrcp.f32 %v866_v8 }
 0x301   :  { %1524 = vrcp.f32 %v1023_v26 }
 0x302   :  { %896 = vrot.lane.b32.xlu1 %v891_v16, %s1614_s2 }
 0x305   :  { %v1521_v23 = vpop.eup %1520 }
 0x306   :  { %v1523_v27 = vpop.eup %1522  ;;  %v798_v32 = vpop.xlane.xlu1 %797 }
 0x307   :  { %v1037_v17 = vpop.f32.mrf.mxu3  ;;  %v890_v28 = vmul.f32 %v1523_v27, %v883_v11  ;;  %v1525_v30 = vpop.eup %1524  ;;  %1526 = vrcp.f32 %v798_v32 }
 0x308   :  { %v1044_v19 = vmul.f32 %v1517_v46, %v1037_v17  ;;  %1528 = vrcp.f32 %v801_v34 }
 0x309   :  { %v961_v21 = vpop.f32.mrf.mxu1 }
 0x30a   :  { %v968_v22 = vmul.f32 %v1519_v20, %v961_v21  ;;  %1048 = vrot.lane.b32.xlu1 %v1044_v19, %s1615_s7 }
 0x30c   :  { %972 = vrot.lane.b32.xlu2 %v968_v22, %s1616_s8 }
 0x30d   :  { %v1527_v36 = vpop.eup %1526 }
 0x30e   :  { %v822_v37 = vmul.f32 %v1527_v36, %v815_v7  ;;  %v1529_v38 = vpop.eup %1528 }
 0x30f   :  { %v1039_v29 = vpop.f32.mrf.mxu3  ;;  %v823_v42 = vmul.f32 %v1529_v38, %v817_v9 }
 0x310   :  { %v1045_v31 = vmul.f32 %v1525_v30, %v1039_v29 }
 0x311   :  { %v963_v24 = vpop.f32.mrf.mxu1 }
 0x312   :  { %v969_v25 = vmul.f32 %v1521_v23, %v963_v24 }
 0x314   :  { %974 = vrot.lane.b32.xlu0 %v969_v25, %s1616_s8 }
 0x31c   :  { %894 = vrot.lane.b32.xlu0 %v890_v28, %s1614_s2 }
 0x324   :  { %1050 = vrot.lane.b32.xlu0 %v1045_v31, %s1615_s7 }
 0x366   :  { %v973_v41 = vpop.permute.xlu2 %972 }
 0x374   :  { %v897_v35 = vpop.permute.xlu1 %896 }
 0x375   :  { %v901_v47 = vadd.f32 %v897_v35, %v823_v42 }
 0x37c   :  { %v1049_v44 = vpop.permute.xlu1 %1048 }
 0x386   :  { %v975_v33 = vpop.permute.xlu0 %974 }
 0x387   :  { %v979_v54 = vadd.f32 %v975_v33, %v901_v47 }
 0x38e   :  { %v895_v39 = vpop.permute.xlu0 %894 }
 0x38f   :  { %v900_v40 = vadd.f32 %v895_v39, %v822_v37 }
 0x391   :  { %v978_v43 = vadd.f32 %v973_v41, %v900_v40 }
 0x393   :  { %v1054_v48 = vadd.f32 %v1049_v44, %v978_v43 }
 0x395   :  { %v1058_v49 = vadd.f32 %v1057_v45, %v1054_v48 }
 0x396   :  { %v1051_v50 = vpop.permute.xlu0 %1050 }
 0x397   :  { %v1055_v51 = vadd.f32 %v1051_v50, %v979_v54  ;;  %1061 = vst.msk [vmem:[%s1732_s4] sm:$0xff] %vm1060_vm3, %v1058_v49 }
 0x399   :  { %v1059_v52 = vadd.f32 %v1057_v45, %v1055_v51 }
 0x39b   :  { %1062 = vst.msk [vmem:[%s1732_s4 + $0x8] sm:$0xff] %vm1060_vm3, %v1059_v52 }
 0x39c   :  { %1067 = vsyncpa [#allocation4], 1 }
 0x39d   :  { %1068 = vsyncpa [#allocation6], 1 }

</bundles_post_ra>
